<compile_context>
chip_gen: v6e
topology: v6e:2x2x1
jax: 0.10.0
libtpu: 0.0.40
codegen_flags: <defaults>
</compile_context>

<pallas_src>
import functools

import jax
import jax.numpy as jnp
from jax.experimental import pallas as pl
from jax.experimental.pallas import tpu as pltpu

LANE = 128          # padded feature width (lanes) for inputs and outputs
TM_MAX = 256        # batch-tile rows once the batch grid kicks in


def _linear_kernel(x_ref, w_ref, o_ref):
    """o = x_aug @ W_aug  (bias already folded into W_aug via the 1-lane)."""
    o_ref[...] = jnp.dot(
        x_ref[...], w_ref[...], preferred_element_type=jnp.float32
    ).astype(o_ref.dtype)


def _round_up(n, m):
    return ((n + m - 1) // m) * m


@functools.partial(jax.jit, static_argnames=("in_dim", "out_dim"))
def _forward_2d(x2d, w_aug, in_dim, out_dim):
    """x2d: (B, in_dim) f32 -> (B, out_dim) f32."""
    batch = x2d.shape[0]
    bp = _round_up(max(batch, 1), 8)          # sublane-aligned padded batch
    tm = bp if bp <= TM_MAX else TM_MAX       # batch tile rows
    bp = _round_up(bp, tm)

    # Per-call padding of x only (constants were padded at setup time).
    # Layout: [x | 1 | 0 ... 0] per row; padded rows are all-zero (they hit
    # zero weight rows, so they contribute nothing and are sliced off below).
    ones = jnp.ones((batch, 1), jnp.float32)
    x_aug = jnp.concatenate([x2d.astype(jnp.float32), ones], axis=1)
    x_aug = jnp.pad(x_aug, ((0, bp - batch), (0, LANE - (in_dim + 1))))

    n_tiles = bp // tm
    if n_tiles == 1:
        # Grid-less single-block call: whole (bp,128) x and (128,128) W in VMEM.
        out_pad = pl.pallas_call(
            _linear_kernel,
            out_shape=jax.ShapeDtypeStruct((bp, LANE), jnp.float32),
        )(x_aug, w_aug)
    else:
        # Batch-tiled grid; weights use a constant index_map so they stay
        # VMEM-resident across tiles. "parallel" lets v7x's 2 TCs split tiles.
        out_pad = pl.pallas_call(
            _linear_kernel,
            out_shape=jax.ShapeDtypeStruct((bp, LANE), jnp.float32),
            grid=(n_tiles,),
            in_specs=[
                pl.BlockSpec((tm, LANE), lambda i: (i, 0)),
                pl.BlockSpec((LANE, LANE), lambda i: (0, 0)),
            ],
            out_specs=pl.BlockSpec((tm, LANE), lambda i: (i, 0)),
            compiler_params=pltpu.CompilerParams(
                dimension_semantics=("parallel",)),
        )(x_aug, w_aug)

    return out_pad[:batch, :out_dim]


class LinearControllerPallas:
    """Pallas mirror of LinearController: forward(x) = x @ K.T + u_equilibrium."""

    def __init__(self, K, u_equilibrium):
        K = jnp.asarray(K, jnp.float32)
        u_eq = jnp.asarray(u_equilibrium, jnp.float32)
        out_dim, in_dim = K.shape
        assert in_dim < LANE and out_dim <= LANE, "dims must fit one lane tile"
        assert u_eq.shape == (out_dim,)
        self.in_dim = int(in_dim)
        self.out_dim = int(out_dim)

        # One-time constant packing: augmented weight with bias row.
        # Invariant: every padded entry is exactly zero (correctness relies
        # on it -- padded x lanes / rows hit zero weight entries).
        w = jnp.zeros((LANE, LANE), jnp.float32)
        w = w.at[:in_dim, :out_dim].set(K.T)
        w = w.at[in_dim, :out_dim].set(u_eq)
        self.w_aug = w

    def __call__(self, x):
        x = jnp.asarray(x)
        lead = x.shape[:-1]
        x2d = x.reshape((-1, self.in_dim))
        y = _forward_2d(x2d, self.w_aug, self.in_dim, self.out_dim)
        return y.reshape(lead + (self.out_dim,))


def _reference_forward(x, K, u_eq):
    """Pure-JAX mirror of torch.nn.functional.linear(x, K, u_eq)."""
    return x @ K.T + u_eq


if __name__ == "__main__":
    key = jax.random.PRNGKey(0)
    k = jax.random.split(key, 3)

    in_dim, out_dim, batch = 2, 1, 2
    K = 0.5 * jax.random.normal(k[0], (out_dim, in_dim), jnp.float32)
    u_eq = jax.random.normal(k[1], (out_dim,), jnp.float32)
    x = jax.random.normal(k[2], (batch, in_dim), jnp.float32)

    ctrl = LinearControllerPallas(K, u_eq)
    out = ctrl(x)
    out = jax.block_until_ready(out)

    ref = _reference_forward(x, K, u_eq)
    assert out.shape == (batch, out_dim)
    assert jnp.allclose(out, ref, atol=1e-5, rtol=1e-5), (out, ref)

    print("KERNEL_OK")
</pallas_src>

<mosaic_0001>
module attributes {stable_mosaic.version = 11 : i64} {
  func.func @_linear_kernel(%arg0: memref<8x128xf32, #tpu.memory_space<vmem>>, %arg1: memref<128x128xf32, #tpu.memory_space<vmem>>, %arg2: memref<8x128xf32, #tpu.memory_space<vmem>>) attributes {dimension_semantics = [], scalar_prefetch = 0 : i64, scratch_operands = 0 : i64, tpu.core_type = #tpu.core_type<tc>} {
    %c0 = arith.constant 0 : index
    %c0_0 = arith.constant 0 : index
    %0 = vector.load %arg0[%c0, %c0_0] : memref<8x128xf32, #tpu.memory_space<vmem>>, vector<8x128xf32>
    %c0_1 = arith.constant 0 : index
    %c0_2 = arith.constant 0 : index
    %1 = vector.load %arg1[%c0_1, %c0_2] : memref<128x128xf32, #tpu.memory_space<vmem>>, vector<128x128xf32>
    %cst = arith.constant dense<0.000000e+00> : vector<8x128xf32>
    %2 = tpu.matmul %0, %1, %cst {dimension_numbers = #tpu.dot_dimension_numbers<[1], [0], [0], [1], [0, 0, 1, 1], [], []>} : vector<8x128xf32>, vector<128x128xf32>, vector<8x128xf32> -> vector<8x128xf32>
    %c0_3 = arith.constant 0 : index
    %c0_4 = arith.constant 0 : index
    %3 = vector.load %arg2[%c0_3, %c0_4] : memref<8x128xf32, #tpu.memory_space<vmem>>, vector<8x128xf32>
    tpu.vector_store %arg2[%c0_3, %c0_4], %2 {strides = array<i32>} : memref<8x128xf32, #tpu.memory_space<vmem>>, vector<8x128xf32>,
    return
  }
}

</mosaic_0001>

<bundles_post_ra>
// kernel: _forward_2d.1
= control target key start
LH: loop header
LB: loop body
LE: loop exit
PB: predicated region body
PF: predicated region fallthrough
CT: control target
= control target key end

     0   :  { %7 = vsyncpa [#allocation3], 0  ;;  %s197_s9 = smov [#allocation2]   ;;  %s226_s0 = inlined_call_operand.vmem [shape: f32[8,128], index: 0, kind: input, shape index: {}]   ;;  %s227_s1 = inlined_call_operand.hbm [shape: f32[128,128], index: 1, kind: input, shape index: {}]   ;;  %s228_s2 = inlined_call_operand.vmem [shape: f32[8,128], index: 2, kind: output, shape index: {}]  }
   0x1   :  { %s15_s10 = sshll.u32 %s197_s9, 4  ;;  %s16_s10 = int_to_ptr.vmem [resolvable:$true] %s15_s10 }
   0x2   :  { %s183_s11 = scalar_lea.vmem %s16_s10, 2048  ;;  %p188_p1 = scmp.lt.s32.totalorder %s16_s10, %s16_s10 }
   0x3   :  { %p184_p0 = scmp.ne.s32.totalorder %s16_s10, %s183_s11  ;;  %p189_p2 = scmp.lt.s32.totalorder %s183_s11, %s183_s11 }
   0x5   :  { %p190_p3 = por %p189_p2, %p188_p1 }
   0x7   :  { %p191_p4 = pnand %p190_p3, %p184_p0 }
   0x9   :  { %194 = shalt.err (!%p191_p4)
}
   0xa   :  { %s198_s12 = smov 128   ;;  %s199_s13 = smov 8  }
   0xb   :  { %21 = dma.hbm_to_vmem [thread:$0]  %s227_s1, 2048, %s16_s10, [#allocation3], %s198_s12, %s198_s12, %s199_s13  }
   0xc   :  { %195 = dma.done.wait [#allocation3], 2048  }
   0xd   :  { %196 = vsyncadd [#allocation3], 4294965248  ;;  %v200_v0 = vmov 0.0   ;;  %vm201_vm0 = vmmov 0   ;;  %v41_v1 = vld [vmem:[#allocation2 + $0x78] sm:$0xff]  ;;  %v40_v2 = vld [vmem:[#allocation2 + $0x70] sm:$0xff] }
   0xe   :  { %135 = vmatprep.subr.mxu0 %v200_v0  ;;  %167 = vmatprep.mubr.msk.f32.mxu0 %vm201_vm0, %v200_v0  ;;  %v39_v3 = vld [vmem:[#allocation2 + $0x68] sm:$0xff]  ;;  %v38_v4 = vld [vmem:[#allocation2 + $0x60] sm:$0xff]  ;;  %v37_v5 = vld [vmem:[#allocation2 + $0x58] sm:$0xff] }
   0xf   :  { %136 = vmatpush3.msra.mxu0 %v41_v1  ;;  %v36_v6 = vld [vmem:[#allocation2 + $0x50] sm:$0xff]  ;;  %v35_v7 = vld [vmem:[#allocation2 + $0x48] sm:$0xff]  ;;  %v34_v8 = vld [vmem:[#allocation2 + $0x40] sm:$0xff] }
  0x10   :  { %137 = vmatprep.subr.mxu0 %v200_v0  ;;  %v33_v9 = vld [vmem:[#allocation2 + $0x38] sm:$0xff]  ;;  %v32_v10 = vld [vmem:[#allocation2 + $0x30] sm:$0xff]  ;;  %v31_v11 = vld [vmem:[#allocation2 + $0x28] sm:$0xff] }
  0x11   :  { %138 = vmatpush3.msra.mxu0 %v40_v2  ;;  %v30_v12 = vld [vmem:[#allocation2 + $0x20] sm:$0xff]  ;;  %v29_v13 = vld [vmem:[#allocation2 + $0x18] sm:$0xff]  ;;  %v28_v14 = vld [vmem:[#allocation2 + $0x10] sm:$0xff] }
  0x12   :  { %139 = vmatprep.subr.mxu0 %v200_v0  ;;  %v27_v15 = vld [vmem:[#allocation2 + $0x8] sm:$0xff]  ;;  %v26_v16 = vld [vmem:[#allocation2] sm:$0xff] }
  0x13   :  { %140 = vmatpush3.msra.mxu0 %v39_v3  ;;  %v25_v17 = vld [vmem:[%s226_s0] sm:$0xff] }
  0x14   :  { %141 = vmatprep.subr.mxu0 %v200_v0 }
  0x15   :  { %142 = vmatpush3.msra.mxu0 %v38_v4 }
  0x16   :  { %143 = vmatprep.subr.mxu0 %v200_v0 }
  0x17   :  { %144 = vmatpush3.msra.mxu0 %v37_v5 }
  0x18   :  { %145 = vmatprep.subr.mxu0 %v200_v0 }
  0x19   :  { %146 = vmatpush3.msra.mxu0 %v36_v6 }
  0x1a   :  { %147 = vmatprep.subr.mxu0 %v200_v0 }
  0x1b   :  { %148 = vmatpush3.msra.mxu0 %v35_v7 }
  0x1c   :  { %149 = vmatprep.subr.mxu0 %v200_v0 }
  0x1d   :  { %150 = vmatpush3.msra.mxu0 %v34_v8 }
  0x1e   :  { %151 = vmatprep.subr.mxu0 %v200_v0 }
  0x1f   :  { %152 = vmatpush3.msra.mxu0 %v33_v9 }
  0x20   :  { %153 = vmatprep.subr.mxu0 %v200_v0 }
  0x21   :  { %154 = vmatpush3.msra.mxu0 %v32_v10 }
  0x22   :  { %155 = vmatprep.subr.mxu0 %v200_v0 }
  0x23   :  { %156 = vmatpush3.msra.mxu0 %v31_v11 }
  0x24   :  { %157 = vmatprep.subr.mxu0 %v200_v0 }
  0x25   :  { %158 = vmatpush3.msra.mxu0 %v30_v12 }
  0x26   :  { %159 = vmatprep.subr.mxu0 %v200_v0 }
  0x27   :  { %160 = vmatpush3.msra.mxu0 %v29_v13 }
  0x28   :  { %161 = vmatprep.subr.mxu0 %v200_v0 }
  0x29   :  { %162 = vmatpush3.msra.mxu0 %v28_v14 }
  0x2a   :  { %163 = vmatprep.subr.mxu0 %v200_v0 }
  0x2b   :  { %164 = vmatpush3.msra.mxu0 %v27_v15 }
  0x2c   :  { %165 = vmatprep.subr.mxu0 %v200_v0 }
  0x2d   :  { %166 = vmatpush3.msra.mxu0 %v26_v16 }
  0x2e   :  { %168 = vmatmul.mubr.f32.vlgmr.msra.gmra.mxu0 %v25_v17 }
  0xee   :  { %v108_v18 = vpop.f32.mrf.mxu0 }
  0xef   :  { %112 = vst [vmem:[%s228_s2] sm:$0xff] %v108_v18 }
  0xf0   :  { %v169_v19 = vpop.f32.mrf.mxu0 }
  0xf1   :  { %117 = vsyncpa [#allocation3], 1 }

</bundles_post_ra>
